<compile_context>
chip_gen: v7x
topology: tpu7x:2x2x1
jax: 0.10.0
libtpu: 0.0.40
codegen_flags: <defaults>
</compile_context>

<pallas_src>
import math

import jax
import jax.numpy as jnp
from jax import lax
from jax.experimental import pallas as pl
from jax.experimental.pallas import tpu as pltpu

M_MARGIN = 5  # AngleLinear default: m=5, phiflag=True

# Thresholds cos(j*pi/m), j=1..m.  cos is monotone decreasing on [0, pi], so
# k = floor(m*arccos(c)/pi) == sum_j [c <= cos(j*pi/m)].
_K_THRESHOLDS = tuple(math.cos(j * math.pi / M_MARGIN) for j in range(1, M_MARGIN + 1))


def angle_linear_kernel(x_ref, xlen_ref, inv_xlen_ref, w_ref,
                        cos_ref, phi_ref, inv_wlen_ref):
    i = pl.program_id(1)          # batch-tile index (inner grid axis)

    # Column inverse L2 norms of the (D, tn) weight block: identical for every
    # inner (batch) step, so compute once per class tile and cache in VMEM.
    # The full-tile read of w only happens inside this guarded region.
    @pl.when(i == 0)
    def _():
        w32 = w_ref[...].astype(jnp.float32)
        inv_wlen_ref[...] = lax.rsqrt(jnp.sum(w32 * w32, axis=0, keepdims=True))

    # MXU matmul with f32 accumulation (operands in their streamed dtype).
    raw = jnp.dot(x_ref[...], w_ref[...], preferred_element_type=jnp.float32)

    xlen = xlen_ref[...]          # (tm, 1)  precomputed in the wrapper
    inv_xlen = inv_xlen_ref[...]  # (tm, 1)

    ct = jnp.clip(raw * inv_wlen_ref[...] * inv_xlen, -1.0, 1.0)
    # Store cos early so `raw` / the cos path die before the phi chain.
    cos_ref[...] = (ct * xlen).astype(cos_ref.dtype)

    # cos(5*theta) Chebyshev polynomial (16c^5 - 20c^3 + 5c), Horner form.
    c2 = ct * ct
    cos_m_theta = ct * (5.0 + c2 * (16.0 * c2 - 20.0))

    # k = floor(m*theta/pi) via threshold compares, accumulated in int32.
    k = jnp.zeros(ct.shape, dtype=jnp.int32)
    for thr in _K_THRESHOLDS:
        k = k + (ct <= thr).astype(jnp.int32)

    # (-1)^k * cos_m_theta - 2k, with parity from a cheap bitwise AND.
    signed = jnp.where((k & 1) == 0, cos_m_theta, -cos_m_theta)
    phi = signed - 2.0 * k.astype(jnp.float32)
    phi_ref[...] = (phi * xlen).astype(phi_ref.dtype)


def angle_linear(x, w, *, tm=None, tn=None, mxu_dtype=None, out_dtype=jnp.float32):
    """AngleLinear forward.  mxu_dtype=jnp.bfloat16 halves the streamed weight
    / activation bytes (big win on HBM-bound v5e/v6e); out_dtype=jnp.bfloat16
    additionally halves the output write.  In-kernel ct/k/phi math stays f32."""
    B, D = x.shape
    D2, C = w.shape
    assert D == D2
    if tm is None:
        tm = min(B, 256)
    if tn is None:
        tn = min(C, 1024)          # main traffic lever; multiple of 256 for MXU
    assert B % tm == 0, f"batch {B} must be divisible by tm={tm}"
    assert C % tn == 0, f"out_features {C} must be divisible by tn={tn}"

    # Row norms hoisted out of the kernel (would otherwise be recomputed
    # C/tn times per batch tile with the class axis outer).  All-zero x rows
    # give NaN, exactly like the PyTorch reference (0/0).
    x32 = x.astype(jnp.float32)
    x2 = jnp.sum(x32 * x32, axis=1, keepdims=True)       # (B, 1)
    inv_xlen = lax.rsqrt(x2)
    xlen = x2 * inv_xlen                                  # == sqrt(x2)

    x_mm = x if mxu_dtype is None else x.astype(mxu_dtype)
    w_mm = w if mxu_dtype is None else w.astype(mxu_dtype)

    x_bytes = jnp.dtype(x_mm.dtype).itemsize
    w_bytes = jnp.dtype(w_mm.dtype).itemsize
    o_bytes = jnp.dtype(out_dtype).itemsize

    # Explicit VMEM budget: double-buffered in/out tiles + inv_wlen scratch +
    # headroom for live f32 epilogue temporaries.  Shrink tn if it would
    # overflow the smallest physical VMEM (v7x: 64 MiB).
    def vmem_estimate(tn_):
        tiles = (tm * D * x_bytes + 2 * tm * 4
                 + D * tn_ * w_bytes + 2 * tm * tn_ * o_bytes)
        return 2 * tiles + tn_ * 4 + 6 * tm * tn_ * 4
    budget = 56 << 20
    while (vmem_estimate(tn) > budget and tn > 256
           and tn % 2 == 0 and C % (tn // 2) == 0):
        tn //= 2
    vmem_limit = int(min(max(vmem_estimate(tn) + (4 << 20), 32 << 20), 64 << 20))

    grid = (C // tn, B // tm)      # class tiles outer, batch tiles inner

    cost = pl.CostEstimate(
        flops=2 * B * C * D,
        transcendentals=C,         # rsqrt over weight-column norms
        bytes_accessed=int((C // tn) * B * (D * x_bytes + 8)   # x + xlen re-reads
                           + D * C * w_bytes                   # W streamed once
                           + 2 * B * C * o_bytes),             # cos + phi writes
    )

    return pl.pallas_call(
        angle_linear_kernel,
        out_shape=(
            jax.ShapeDtypeStruct((B, C), out_dtype),
            jax.ShapeDtypeStruct((B, C), out_dtype),
        ),
        grid_spec=pltpu.PrefetchScalarGridSpec(
            num_scalar_prefetch=0,
            grid=grid,
            in_specs=[
                pl.BlockSpec((tm, D), lambda j, i: (i, 0)),   # x tile
                pl.BlockSpec((tm, 1), lambda j, i: (i, 0)),   # xlen
                pl.BlockSpec((tm, 1), lambda j, i: (i, 0)),   # inv_xlen
                pl.BlockSpec((D, tn), lambda j, i: (0, j)),   # w tile (resident over i)
            ],
            out_specs=(
                pl.BlockSpec((tm, tn), lambda j, i: (i, j)),
                pl.BlockSpec((tm, tn), lambda j, i: (i, j)),
            ),
            scratch_shapes=[pltpu.VMEM((1, tn), jnp.float32)],  # cached inv ||w_j||
        ),
        compiler_params=pltpu.CompilerParams(
            # Class axis is embarrassingly parallel (megacore / v7x 2 TCs) and
            # gives each core a disjoint slice of W; the inner batch axis
            # carries the cached inv_wlen scratch, so keep it arbitrary.
            dimension_semantics=("parallel", "arbitrary"),
            vmem_limit_bytes=vmem_limit,
        ),
        cost_estimate=cost,
    )(x_mm, xlen, inv_xlen, w_mm)


def angle_linear_ref(x, w):
    """Pure-JAX mirror of the PyTorch forward (phiflag=True, m=5)."""
    wnorm = jnp.sqrt(jnp.sum(w * w, axis=0, keepdims=True))
    scale = jnp.where(wnorm > 1e-5, 1e-5 / (wnorm + 1e-7), 1.0) * 1e5
    ww = w * scale
    xlen = jnp.sqrt(jnp.sum(x * x, axis=1, keepdims=True))
    wlen = jnp.sqrt(jnp.sum(ww * ww, axis=0, keepdims=True))
    ct = jnp.clip(x @ ww / xlen / wlen, -1.0, 1.0)
    cmt = 16.0 * ct**5 - 20.0 * ct**3 + 5.0 * ct
    theta = jnp.arccos(ct)
    k = jnp.floor(M_MARGIN * theta / jnp.pi)
    phi = (1.0 - 2.0 * jnp.mod(k, 2.0)) * cmt - 2.0 * k
    return ct * xlen, phi * xlen


if __name__ == "__main__":
    key = jax.random.PRNGKey(0)
    kx, kw = jax.random.split(key)

    B, in_features, out_features = 8, 64, 128

    x = jax.random.normal(kx, (B, in_features), dtype=jnp.float32)

    # Deterministic parameter init, mirroring:
    #   weight.data.uniform_(-1, 1).renorm_(2, 1, 1e-5).mul_(1e5)
    w0 = jax.random.uniform(kw, (in_features, out_features),
                            dtype=jnp.float32, minval=-1.0, maxval=1.0)
    col_norm = jnp.sqrt(jnp.sum(w0 * w0, axis=0, keepdims=True))
    w = w0 * jnp.where(col_norm > 1e-5, 1e-5 / (col_norm + 1e-7), 1.0) * 1e5

    cos_r, phi_r = angle_linear_ref(x, w)

    # Full-precision path: tight check against the reference.
    cos_t, phi_t = angle_linear(x, w)
    jax.block_until_ready((cos_t, phi_t))
    assert jnp.allclose(cos_t, cos_r, atol=1e-4, rtol=1e-4)
    assert jnp.allclose(phi_t, phi_r, atol=1e-3, rtol=1e-3)

    # bf16 traffic-optimized path (the HBM win on v5e/v6e): looser checks.
    # phi is compared only away from the k-thresholds, where a bf16-induced
    # flip of the discrete k would be a legitimate (large) difference.
    cos_b, phi_b = angle_linear(x, w, mxu_dtype=jnp.bfloat16,
                                out_dtype=jnp.bfloat16)
    jax.block_until_ready((cos_b, phi_b))
    xlen_full = jnp.sqrt(jnp.sum(x * x, axis=1, keepdims=True))
    ct_ref = cos_r / xlen_full
    thr = jnp.asarray(_K_THRESHOLDS, dtype=jnp.float32)
    margin = jnp.min(jnp.abs(ct_ref[..., None] - thr), axis=-1)
    safe = margin > 0.02
    assert jnp.allclose(cos_b.astype(jnp.float32), cos_r, atol=0.15)
    phi_err = jnp.abs(phi_b.astype(jnp.float32) - phi_r)
    assert jnp.all(jnp.where(safe, phi_err, 0.0) < 1.5)

    print("KERNEL_OK")
</pallas_src>

<mosaic_0001>
module attributes {stable_mosaic.version = 11 : i64} {
  func.func @angle_linear_kernel(%arg0: i32, %arg1: i32, %arg2: memref<8x64xf32, #tpu.memory_space<vmem>>, %arg3: memref<8x1xf32, #tpu.memory_space<vmem>>, %arg4: memref<8x1xf32, #tpu.memory_space<vmem>>, %arg5: memref<64x128xf32, #tpu.memory_space<vmem>>, %arg6: memref<8x128xf32, #tpu.memory_space<vmem>>, %arg7: memref<8x128xf32, #tpu.memory_space<vmem>>, %arg8: memref<1x128xf32, #tpu.memory_space<vmem>>) attributes {dimension_semantics = [#tpu.dimension_semantics<parallel>, #tpu.dimension_semantics<arbitrary>], iteration_bounds = array<i64: 1, 1>, scalar_prefetch = 0 : i64, scratch_operands = 1 : i64, tpu.core_type = #tpu.core_type<tc>, window_params = [{transform_indices = @transform_0, window_bounds = array<i64: 8, 64>}, {transform_indices = @transform_1, window_bounds = array<i64: 8, 1>}, {transform_indices = @transform_2, window_bounds = array<i64: 8, 1>}, {transform_indices = @transform_3, window_bounds = array<i64: 64, 128>}, {transform_indices = @transform_4, window_bounds = array<i64: 8, 128>}, {transform_indices = @transform_5, window_bounds = array<i64: 8, 128>}]} {
    %c0_i32 = arith.constant 0 : i32
    %0 = arith.cmpi eq, %arg1, %c0_i32 : i32
    %1 = arith.extui %0 : i1 to i32
    %c0_i32_0 = arith.constant 0 : i32
    %2 = arith.cmpi ne, %1, %c0_i32_0 : i32
    scf.if %2 {
      %c0_28 = arith.constant 0 : index
      %c0_29 = arith.constant 0 : index
      %64 = vector.load %arg5[%c0_28, %c0_29] : memref<64x128xf32, #tpu.memory_space<vmem>>, vector<64x128xf32>
      %65 = arith.mulf %64, %64 : vector<64x128xf32>
      %cst_30 = arith.constant dense<0.000000e+00> : vector<128xf32>
      %66 = vector.multi_reduction <add>, %65, %cst_30 [0] : vector<64x128xf32> to vector<128xf32>
      %67 = vector.shape_cast %66 : vector<128xf32> to vector<1x128xf32>
      %68 = math.rsqrt %67 : vector<1x128xf32>
      %c0_31 = arith.constant 0 : index
      %c0_32 = arith.constant 0 : index
      %69 = vector.load %arg8[%c0_31, %c0_32] : memref<1x128xf32, #tpu.memory_space<vmem>>, vector<1x128xf32>
      tpu.vector_store %arg8[%c0_31, %c0_32], %68 {strides = array<i32>} : memref<1x128xf32, #tpu.memory_space<vmem>>, vector<1x128xf32>,
    } else {
    }
    %c0 = arith.constant 0 : index
    %c0_1 = arith.constant 0 : index
    %3 = vector.load %arg2[%c0, %c0_1] : memref<8x64xf32, #tpu.memory_space<vmem>>, vector<8x64xf32>
    %c0_2 = arith.constant 0 : index
    %c0_3 = arith.constant 0 : index
    %4 = vector.load %arg5[%c0_2, %c0_3] : memref<64x128xf32, #tpu.memory_space<vmem>>, vector<64x128xf32>
    %cst = arith.constant dense<0.000000e+00> : vector<8x128xf32>
    %5 = tpu.matmul %3, %4, %cst {dimension_numbers = #tpu.dot_dimension_numbers<[1], [0], [0], [1], [0, 0, 1, 1], [], []>} : vector<8x64xf32>, vector<64x128xf32>, vector<8x128xf32> -> vector<8x128xf32>
    %c0_4 = arith.constant 0 : index
    %c0_5 = arith.constant 0 : index
    %6 = vector.load %arg3[%c0_4, %c0_5] : memref<8x1xf32, #tpu.memory_space<vmem>>, vector<8x1xf32>
    %c0_6 = arith.constant 0 : index
    %c0_7 = arith.constant 0 : index
    %7 = vector.load %arg4[%c0_6, %c0_7] : memref<8x1xf32, #tpu.memory_space<vmem>>, vector<8x1xf32>
    %c0_8 = arith.constant 0 : index
    %c0_9 = arith.constant 0 : index
    %8 = vector.load %arg8[%c0_8, %c0_9] : memref<1x128xf32, #tpu.memory_space<vmem>>, vector<1x128xf32>
    %9 = vector.broadcast %8 : vector<1x128xf32> to vector<8x128xf32>
    %10 = arith.mulf %5, %9 : vector<8x128xf32>
    %11 = vector.broadcast %7 : vector<8x1xf32> to vector<8x128xf32>
    %12 = arith.mulf %10, %11 : vector<8x128xf32>
    %cst_10 = arith.constant -1.000000e+00 : f32
    %cst_11 = arith.constant 1.000000e+00 : f32
    %13 = vector.broadcast %cst_10 : f32 to vector<8x128xf32>
    %14 = arith.maximumf %13, %12 : vector<8x128xf32>
    %15 = vector.broadcast %cst_11 : f32 to vector<8x128xf32>
    %16 = arith.minimumf %15, %14 : vector<8x128xf32>
    %17 = vector.broadcast %6 : vector<8x1xf32> to vector<8x128xf32>
    %18 = arith.mulf %16, %17 : vector<8x128xf32>
    %c0_12 = arith.constant 0 : index
    %c0_13 = arith.constant 0 : index
    %19 = vector.load %arg6[%c0_12, %c0_13] : memref<8x128xf32, #tpu.memory_space<vmem>>, vector<8x128xf32>
    tpu.vector_store %arg6[%c0_12, %c0_13], %18 {strides = array<i32>} : memref<8x128xf32, #tpu.memory_space<vmem>>, vector<8x128xf32>,
    %20 = arith.mulf %16, %16 : vector<8x128xf32>
    %cst_14 = arith.constant 1.600000e+01 : f32
    %21 = vector.broadcast %cst_14 : f32 to vector<8x128xf32>
    %22 = arith.mulf %21, %20 : vector<8x128xf32>
    %cst_15 = arith.constant 2.000000e+01 : f32
    %23 = vector.broadcast %cst_15 : f32 to vector<8x128xf32>
    %24 = arith.subf %22, %23 : vector<8x128xf32>
    %25 = arith.mulf %20, %24 : vector<8x128xf32>
    %cst_16 = arith.constant 5.000000e+00 : f32
    %26 = vector.broadcast %cst_16 : f32 to vector<8x128xf32>
    %27 = arith.addf %26, %25 : vector<8x128xf32>
    %28 = arith.mulf %16, %27 : vector<8x128xf32>
    %c0_i32_17 = arith.constant 0 : i32
    %29 = vector.broadcast %c0_i32_17 : i32 to vector<8x128xi32>
    %cst_18 = arith.constant 8.090170e-01 : f32
    %30 = vector.broadcast %cst_18 : f32 to vector<8x128xf32>
    %31 = arith.cmpf ole, %16, %30 : vector<8x128xf32>
    %32 = arith.extui %31 : vector<8x128xi1> to vector<8x128xi32>
    %33 = arith.addi %29, %32 : vector<8x128xi32>
    %cst_19 = arith.constant 3.090170e-01 : f32
    %34 = vector.broadcast %cst_19 : f32 to vector<8x128xf32>
    %35 = arith.cmpf ole, %16, %34 : vector<8x128xf32>
    %36 = arith.extui %35 : vector<8x128xi1> to vector<8x128xi32>
    %37 = arith.addi %33, %36 : vector<8x128xi32>
    %cst_20 = arith.constant -3.090170e-01 : f32
    %38 = vector.broadcast %cst_20 : f32 to vector<8x128xf32>
    %39 = arith.cmpf ole, %16, %38 : vector<8x128xf32>
    %40 = arith.extui %39 : vector<8x128xi1> to vector<8x128xi32>
    %41 = arith.addi %37, %40 : vector<8x128xi32>
    %cst_21 = arith.constant -8.090170e-01 : f32
    %42 = vector.broadcast %cst_21 : f32 to vector<8x128xf32>
    %43 = arith.cmpf ole, %16, %42 : vector<8x128xf32>
    %44 = arith.extui %43 : vector<8x128xi1> to vector<8x128xi32>
    %45 = arith.addi %41, %44 : vector<8x128xi32>
    %cst_22 = arith.constant -1.000000e+00 : f32
    %46 = vector.broadcast %cst_22 : f32 to vector<8x128xf32>
    %47 = arith.cmpf ole, %16, %46 : vector<8x128xf32>
    %48 = arith.extui %47 : vector<8x128xi1> to vector<8x128xi32>
    %49 = arith.addi %45, %48 : vector<8x128xi32>
    %c1_i32 = arith.constant 1 : i32
    %50 = vector.broadcast %c1_i32 : i32 to vector<8x128xi32>
    %51 = arith.andi %49, %50 : vector<8x128xi32>
    %c0_i32_23 = arith.constant 0 : i32
    %52 = vector.broadcast %c0_i32_23 : i32 to vector<8x128xi32>
    %53 = arith.cmpi eq, %51, %52 : vector<8x128xi32>
    %cst_24 = arith.constant 0.000000e+00 : f32
    %54 = vector.broadcast %cst_24 : f32 to vector<8x128xf32>
    %55 = arith.subf %54, %28 : vector<8x128xf32>
    %56 = arith.select %53, %28, %55 : vector<8x128xi1>, vector<8x128xf32>
    %57 = arith.sitofp %49 : vector<8x128xi32> to vector<8x128xf32>
    %cst_25 = arith.constant 2.000000e+00 : f32
    %58 = vector.broadcast %cst_25 : f32 to vector<8x128xf32>
    %59 = arith.mulf %58, %57 : vector<8x128xf32>
    %60 = arith.subf %56, %59 : vector<8x128xf32>
    %61 = vector.broadcast %6 : vector<8x1xf32> to vector<8x128xf32>
    %62 = arith.mulf %60, %61 : vector<8x128xf32>
    %c0_26 = arith.constant 0 : index
    %c0_27 = arith.constant 0 : index
    %63 = vector.load %arg7[%c0_26, %c0_27] : memref<8x128xf32, #tpu.memory_space<vmem>>, vector<8x128xf32>
    tpu.vector_store %arg7[%c0_26, %c0_27], %62 {strides = array<i32>} : memref<8x128xf32, #tpu.memory_space<vmem>>, vector<8x128xf32>,
    return
  }
  func.func @transform_0(%arg0: i32, %arg1: i32) -> (i32, i32) {
    %c0_i32 = arith.constant 0 : i32
    %c0_i32_0 = arith.constant 0 : i32
    return %arg1, %c0_i32 : i32, i32
  }
  func.func @transform_1(%arg0: i32, %arg1: i32) -> (i32, i32) {
    %c0_i32 = arith.constant 0 : i32
    %c0_i32_0 = arith.constant 0 : i32
    return %arg1, %c0_i32 : i32, i32
  }
  func.func @transform_2(%arg0: i32, %arg1: i32) -> (i32, i32) {
    %c0_i32 = arith.constant 0 : i32
    %c0_i32_0 = arith.constant 0 : i32
    return %arg1, %c0_i32 : i32, i32
  }
  func.func @transform_3(%arg0: i32, %arg1: i32) -> (i32, i32) {
    %c0_i32 = arith.constant 0 : i32
    %c0_i32_0 = arith.constant 0 : i32
    return %c0_i32, %arg0 : i32, i32
  }
  func.func @transform_4(%arg0: i32, %arg1: i32) -> (i32, i32) {
    %c0_i32 = arith.constant 0 : i32
    return %arg1, %arg0 : i32, i32
  }
  func.func @transform_5(%arg0: i32, %arg1: i32) -> (i32, i32) {
    %c0_i32 = arith.constant 0 : i32
    return %arg1, %arg0 : i32, i32
  }
}

</mosaic_0001>

<bundles_post_ra>
// kernel: tpu_custom_call.1
= control target key start
LH: loop header
LB: loop body
LE: loop exit
PB: predicated region body
PF: predicated region fallthrough
CT: control target
= control target key end

     0   :  { %11 = vsyncpa [#allocation4], 0  ;;  %s455_s0 = inlined_call_operand.vmem [shape: f32[8,64], index: 0, kind: input, shape index: {}]   ;;  %s456_s1 = inlined_call_operand.vmem [shape: f32[8,1], index: 1, kind: input, shape index: {}]   ;;  %s457_s2 = inlined_call_operand.vmem [shape: f32[8,1], index: 2, kind: input, shape index: {}]   ;;  %s458_s3 = inlined_call_operand.hbm [shape: f32[64,128], index: 3, kind: input, shape index: {}]   ;;  %s459_s4 = inlined_call_operand.hbm [shape: f32[8,128], index: 4, kind: output, shape index: {0}]   ;;  %s460_s5 = inlined_call_operand.hbm [shape: f32[8,128], index: 5, kind: output, shape index: {1}]  }
   0x1   :  { %12 = vsyncpa [#allocation5], 0 }
   0x2   :  { %13 = vsyncpa [#allocation8], 0  ;;  %s364_s18 = smov [#allocation3]   ;;  %s292_s22 = scalar_lea.hbm %s458_s3, 1024 }
   0x3   :  { %s25_s19 = sshll.u32 %s364_s18, 4  ;;  %p293_p0 = scmp.ne.s32.totalorder %s458_s3, %s292_s22  ;;  %s26_s19 = int_to_ptr.vmem [resolvable:$true] %s25_s19 }
   0x4   :  { %p296_p1 = scmp.lt.u32.totalorder %s292_s22, %s458_s3 }
   0x6   :  { %p298_p2 = pnand %p296_p1, %p293_p0 }
   0x8   :  { %301 = shalt.err (!%p298_p2)
}
   0x9   :  { %s302_s27 = scalar_lea.vmem %s26_s19, 1024  ;;  %p307_p4 = scmp.lt.s32.totalorder %s26_s19, %s26_s19 }
   0xa   :  { %p303_p3 = scmp.ne.s32.totalorder %s26_s19, %s302_s27  ;;  %p308_p5 = scmp.lt.s32.totalorder %s302_s27, %s302_s27 }
   0xc   :  { %p309_p6 = por %p308_p5, %p307_p4 }
   0xe   :  { %p310_p7 = pnand %p309_p6, %p303_p3 }
  0x10   :  { %313 = shalt.err (!%p310_p7)
}
  0x11   :  { %s365_s28 = smov 128   ;;  %s366_s29 = smov 8  }
  0x12   :  { %31 = dma.hbm_to_vmem [thread:$0]  %s458_s3, 1024, %s26_s19, [#allocation4], %s365_s28, %s365_s28, %s366_s29  }
  0x13   :  { %358 = dma.done.wait [#allocation4], 1024  }
  0x14   :  { %359 = vsyncadd [#allocation4], 4294966272  ;;  %v367_v0 = vmov 0.0|0.0   ;;  %vm368_vm0 = vmmov 0   ;;  %v369_v1 = vmov 0.0   ;;  %v370_v2 = vmov 0  }
  0x15   :  { %268 = vmatprep.subr.bf16.mxu0 %v367_v0  ;;  %265 = vmatprep.mubr.msk.f32.mxu0 %vm368_vm0, %v369_v1  ;;  %v71_v3 = vld [vmem:[#allocation3] sm:$0xff]  ;;  %v72_v4 = vld [vmem:[#allocation3 + $0x8] sm:$0xff]  ;;  %v73_v5 = vld [vmem:[#allocation3 + $0x10] sm:$0xff]  ;;  %vm79_vm1 = vcmask 523264  }
  0x16   :  { %289 = vset.pattern.permute.xlu0 %v370_v2  ;;  %v269_v6 = vpack.c.bf16 %v72_v4, %v71_v3  ;;  %v74_v7 = vld [vmem:[#allocation3 + $0x18] sm:$0xff]  ;;  %v47_v10 = vmul.f32 %v71_v3, %v71_v3  ;;  %v48_v11 = vmul.f32 %v72_v4, %v72_v4  ;;  %v49_v12 = vmul.f32 %v73_v5, %v73_v5  ;;  %v75_v13 = vld [vmem:[#allocation3 + $0x20] sm:$0xff]  ;;  %v76_v14 = vld [vmem:[#allocation3 + $0x28] sm:$0xff] }
  0x17   :  { %v272_v8 = vpack.c.bf16 %v74_v7, %v73_v5  ;;  %v154_v9 = vld [vmem:[%s457_s2] sm:$0xff]  ;;  %v50_v16 = vmul.f32 %v74_v7, %v74_v7  ;;  %v275_v18 = vpack.c.bf16 %v76_v14, %v75_v13  ;;  %v51_v19 = vmul.f32 %v75_v13, %v75_v13  ;;  %v77_v21 = vld [vmem:[#allocation3 + $0x30] sm:$0xff] }
  0x18   :  { %270 = vmatpush3.bf16.msra.mxu0 %v269_v6  ;;  %165 = vperm.xlu0 %289, %v154_v9   ;;  %v153_v15 = vld [vmem:[%s456_s1] sm:$0xff]  ;;  %v55_v17 = vadd.f32 %v48_v11, %v47_v10  ;;  %v52_v23 = vmul.f32 %v76_v14, %v76_v14  ;;  %v53_v26 = vmul.f32 %v77_v21, %v77_v21 }
  0x19   :  { %271 = vmatprep.subr.bf16.mxu0 %v367_v0  ;;  %v78_v22 = vld [vmem:[#allocation3 + $0x38] sm:$0xff] }
  0x1a   :  { %v56_v20 = vadd.f32 %v55_v17, %v49_v12  ;;  %v278_v25 = vpack.c.bf16 %v78_v22, %v77_v21  ;;  %v54_v28 = vmul.f32 %v78_v22, %v78_v22  ;;  %v70_v30 = vld [vmem:[%s455_s0] sm:$0xff]  ;;  %s371_s0 = smov [#allocation6]  }
  0x1b   :  { %s213_s10 = sshll.u32 %s371_s0, 4  ;;  %s214_s10 = int_to_ptr.vmem [resolvable:$true] %s213_s10 }
  0x1c   :  { %273 = vmatpush3.bf16.msra.mxu0 %v272_v8  ;;  %173 = vperm.xlu0 %289, %v153_v15   ;;  %v57_v24 = vadd.f32 %v56_v20, %v50_v16  ;;  %s314_s11 = scalar_lea.vmem %s214_s10, 128  ;;  %p319_p9 = scmp.lt.s32.totalorder %s214_s10, %s214_s10 }
  0x1d   :  { %274 = vmatprep.subr.bf16.mxu0 %v367_v0  ;;  %p315_p8 = scmp.ne.s32.totalorder %s214_s10, %s314_s11  ;;  %p320_p10 = scmp.lt.s32.totalorder %s314_s11, %s314_s11 }
  0x1e   :  { %v58_v27 = vadd.f32 %v57_v24, %v51_v19 }
  0x1f   :  { %p321_p11 = por %p320_p10, %p319_p9 }
  0x20   :  { %276 = vmatpush3.bf16.msra.mxu0 %v275_v18  ;;  %v59_v29 = vadd.f32 %v58_v27, %v52_v23 }
  0x21   :  { %277 = vmatprep.subr.bf16.mxu0 %v367_v0  ;;  %p322_p12 = pnand %p321_p11, %p315_p8 }
  0x22   :  { %v60_v31 = vadd.f32 %v59_v29, %v53_v26 }
  0x24   :  { %279 = vmatpush3.bf16.msra.mxu0 %v278_v25  ;;  %v61_v32 = vadd.f32 %v60_v31, %v54_v28 }
  0x26   :  { %v62_v33 = vrot.slane %v61_v32, 4 }
  0x27   :  { %266 = vmatmul.mubr.msk.f32.vlgmr.msra.gmra.mrb[0].mxu0 %vm79_vm1, %v70_v30 }
  0x28   :  { %v63_v34 = vadd.f32 %v62_v33, %v61_v32 }
  0x2a   :  { %v64_v35 = vrot.slane %v63_v34, 2 }
  0x2c   :  { %v65_v36 = vadd.f32 %v64_v35, %v63_v34 }
  0x2e   :  { %v66_v37 = vrot.slane %v65_v36, 1 }
  0x30   :  { %v67_v38 = vadd.f32 %v66_v37, %v65_v36 }
  0x32   :  { %290 = vrsqrt.f32 %v67_v38 }
  0x3c   :  { %v291_v39 = vpop.eup %290 }
  0x3d   :  { %69 = vst [vmem:[#allocation2] sm:$0x1] %v291_v39 }
  0x44   :  { %v237_v40 = vld [vmem:[#allocation2] ss:$0 sm:$0xff] }
  0x97   :  { %v166_v41 = vpop.permute.xlu0 %165 }
  0x9b   :  { %v174_v47 = vpop.permute.xlu0 %173 }
  0xfa   :  { %v149_v42 = vpop.f32.mrb[0].mxu0 }
  0xfb   :  { %v162_v43 = vmul.f32 %v237_v40, %v149_v42  ;;  %v267_v44 = vpop.f32.mrb[1].mxu0 }
  0xfd   :  { %v168_v45 = vmul.f32 %v166_v41, %v162_v43 }
  0xff   :  { %v238_v46 = vclamps-f32 %v168_v45, 1.0 }
 0x101   :  { %v176_v48 = vmul.f32 %v238_v46, %v174_v47  ;;  %v178_v49 = vmul.f32 %v238_v46, %v238_v46  ;;  %vm184_vm2 = vcmp.le.f32.partialorder %v238_v46, 0.809017  ;;  %vm186_vm3 = vcmp.le.f32.partialorder %v238_v46, 0.309017 }
 0x102   :  { %v185_v50 = vsel %vm184_vm2, 1, %v370_v2  ;;  %v187_v51 = vsel %vm186_vm3, 1, %v370_v2  ;;  %vm189_vm4 = vcmp.le.f32.partialorder %v238_v46, -0.309017  ;;  %vm192_vm5 = vcmp.le.f32.partialorder %v238_v46, -0.809017 }
 0x103   :  { %v179_v52 = vmul.f32 16.0, %v178_v49  ;;  %v188_v53 = vadd.s32 %v187_v51, %v185_v50  ;;  %177 = vst [vmem:[#allocation6] sm:$0xff] %v176_v48  ;;  %v190_v54 = vsel %vm189_vm4, 1, %v370_v2 }
 0x104   :  { %325 = shalt.err (!%p322_p12)
}
 0x105   :  { %s326_s14 = scalar_lea.hbm %s459_s4, 128 }
 0x106   :  { %p327_p13 = scmp.ne.s32.totalorder %s459_s4, %s326_s14  ;;  %p330_p0 = scmp.lt.u32.totalorder %s326_s14, %s459_s4 }
 0x108   :  { %p332_p1 = pnand %p330_p0, %p327_p13 }
 0x10a   :  { %335 = shalt.err (!%p332_p1)
}
 0x10b   :  { %216 = dma.vmem_to_hbm [thread:$0]  %s214_s10, 128, %s459_s4, [#allocation5]   ;;  %v239_v55 = vadd.f32 -20.0, %v179_v52  ;;  %v191_v56 = vadd.s32 %v190_v54, %v188_v53  ;;  %vm195_vm6 = vcmp.le.f32.partialorder %v238_v46, -1.0  ;;  %v193_v57 = vsel %vm192_vm5, 1, %v370_v2 }
 0x10c   :  { %v196_v60 = vsel %vm195_vm6, 1, %v370_v2  ;;  %s372_s4 = smov [#allocation7]  }
 0x10d   :  { %v181_v58 = vmul.f32 %v239_v55, %v178_v49  ;;  %v194_v59 = vadd.s32 %v193_v57, %v191_v56  ;;  %s223_s21 = sshll.u32 %s372_s4, 4  ;;  %s224_s21 = int_to_ptr.vmem [resolvable:$true] %s223_s21 }
 0x10e   :  { %s336_s22 = scalar_lea.vmem %s224_s21, 128  ;;  %p341_p3 = scmp.lt.s32.totalorder %s224_s21, %s224_s21 }
 0x10f   :  { %v182_v61 = vadd.f32 5.0, %v181_v58  ;;  %v197_v62 = vadd.s32 %v196_v60, %v194_v59  ;;  %p337_p2 = scmp.ne.s32.totalorder %s224_s21, %s336_s22  ;;  %p342_p4 = scmp.lt.s32.totalorder %s336_s22, %s336_s22 }
 0x111   :  { %v183_v63 = vmul.f32 %v238_v46, %v182_v61  ;;  %v198_v0 = vand.u32 1, %v197_v62  ;;  %v202_v1 = vcvt.s32.f32 %v197_v62  ;;  %p343_p5 = por %p342_p4, %p341_p3 }
 0x113   :  { %vm199_vm7 = vcmp.eq.s32.totalorder %v198_v0, 0  ;;  %v200_v3 = vsub.f32 0.0, %v183_v63  ;;  %v203_v4 = vmul.f32 2.0, %v202_v1  ;;  %p344_p6 = pnand %p343_p5, %p337_p2 }
 0x115   :  { %v201_v5 = vsel %vm199_vm7, %v183_v63, %v200_v3 }
 0x116   :  { %v204_v6 = vsub.f32 %v201_v5, %v203_v4 }
 0x118   :  { %v205_v7 = vmul.f32 %v204_v6, %v174_v47 }
 0x11a   :  { %206 = vst [vmem:[#allocation7] sm:$0xff] %v205_v7 }
 0x11b   :  { %347 = shalt.err (!%p344_p6)
}
 0x11c   :  { %s348_s25 = scalar_lea.hbm %s460_s5, 128 }
 0x11d   :  { %p349_p7 = scmp.ne.s32.totalorder %s460_s5, %s348_s25  ;;  %p352_p8 = scmp.lt.u32.totalorder %s348_s25, %s460_s5 }
 0x11f   :  { %p354_p9 = pnand %p352_p8, %p349_p7 }
 0x121   :  { %357 = shalt.err (!%p354_p9)
}
 0x122   :  { %226 = dma.vmem_to_hbm [thread:$0]  %s224_s21, 128, %s460_s5, [#allocation8]  }
 0x123   :  { %360 = dma.done.wait [#allocation5], 128  }
 0x124   :  { %361 = vsyncadd [#allocation5], 4294967168 }
 0x125   :  { %362 = dma.done.wait [#allocation8], 128  }
 0x126   :  { %363 = vsyncadd [#allocation8], 4294967168 }
 0x127   :  { %233 = vsyncpa [#allocation4], 1 }
 0x128   :  { %234 = vsyncpa [#allocation5], 1 }
 0x129   :  { %235 = vsyncpa [#allocation8], 1 }

</bundles_post_ra>
